<compile_context>
chip_gen: v5e
topology: v5e:2x2
jax: 0.10.0
libtpu: 0.0.40
codegen_flags: <defaults>
</compile_context>

<pallas_src>
import math

import jax
import jax.numpy as jnp
from jax.experimental import pallas as pl
from jax.experimental.pallas import tpu as pltpu


def _bomb_mask_kernel(m_ref, x_ref, o_ref):
    # m_ref is (1, Rt, 1) (mask along sublanes) or (1, 1, Lt) (mask along
    # lanes); jnp broadcasting handles both.  Single vld + vmul + vst.
    o_ref[...] = x_ref[...] * m_ref[...]


def _pick_tile(n, unit, cap):
    """Largest t <= cap with t % unit == 0 and n % t == 0; else n (full extent)."""
    if n <= cap:
        return n
    t = (cap // unit) * unit
    while t >= unit:
        if n % t == 0:
            return t
        t -= unit
    return n


def _pack_factor(a, l0, target=128):
    """Smallest divisor g of `a` with g * l0 >= target (falls back to a)."""
    if l0 >= target or a <= 1:
        return 1
    for g in range(1, a + 1):
        if a % g == 0 and g * l0 >= target:
            return g
    return a


def bomb_maker_forward(x, key, *, p=0.5, dim=-1, training=True):
    """JAX/Pallas equivalent of BombMaker.forward.

    Note: the PyTorch module always uses nn.Dropout2d()'s default p=0.5 (its
    own self.p is never used); pass p=0.5 to reproduce it exactly.
    """
    if not training:
        return x  # nn.Dropout2d is the identity in eval mode

    ndim = x.ndim
    assert ndim >= 2, "BombMaker expects at least a 2-D input"
    dim = dim % ndim
    if dim == 0:
        # torch's transpose(1, 0) + Dropout2d draws an independent mask per
        # (axis0, axis1) pair, which is exactly the dim=1 behaviour.
        dim = 1

    shape = x.shape
    N = shape[0]
    D = shape[dim]
    A = math.prod(shape[1:dim])        # dims between batch and masked axis
    B = math.prod(shape[dim + 1:])     # dims after the masked axis

    # One Bernoulli draw per (batch, masked-index); survivors scaled by 1/(1-p).
    keep = jax.random.bernoulli(key, 1.0 - p, (N, D))
    m = (keep.astype(jnp.float32) / (1.0 - p)).astype(x.dtype)

    LANE, SUB = 128, 8
    R_CAP, L_CAP = 1024, 512  # block <= 512K elems -> ~8 MiB pipelined (f32)

    if B >= LANE:
        # Trailing dims are lane-dense already; mask varies along sublanes.
        R, L = A * D, B
        xv = x.reshape(N, R, L)
        mv = jnp.tile(m, (1, A)).reshape(N, R, 1)          # row r -> m[n, r % D]
        Rt = _pick_tile(R, SUB, R_CAP)
        Lt = _pick_tile(L, LANE, L_CAP)
        mask_spec = pl.BlockSpec((1, Rt, 1), lambda n, r, l: (n, r, 0))
    else:
        # Masked axis (x trailing dims) lands in lanes; pack g leading rows
        # together so the lane width reaches >= 128, and tile the mask to match.
        L0 = D * B
        g = _pack_factor(A, L0, LANE)
        R, L = A // g, g * L0
        xv = x.reshape(N, R, L)
        mv = jnp.tile(jnp.repeat(m, B, axis=1), (1, g)).reshape(N, 1, L)
        Rt = _pick_tile(R, SUB, R_CAP)
        Lt = _pick_tile(L, LANE, L_CAP)
        mask_spec = pl.BlockSpec((1, 1, Lt), lambda n, r, l: (n, 0, l))

    grid = (N, R // Rt, L // Lt)

    out_v = pl.pallas_call(
        _bomb_mask_kernel,
        out_shape=jax.ShapeDtypeStruct(xv.shape, xv.dtype),
        grid=grid,
        in_specs=[
            mask_spec,
            pl.BlockSpec((1, Rt, Lt), lambda n, r, l: (n, r, l)),
        ],
        out_specs=pl.BlockSpec((1, Rt, Lt), lambda n, r, l: (n, r, l)),
        compiler_params=pltpu.CompilerParams(
            dimension_semantics=("parallel", "parallel", "parallel"),
            vmem_limit_bytes=32 * 1024 * 1024,
        ),
    )(mv, xv)

    return out_v.reshape(shape)


if __name__ == "__main__":
    key = jax.random.PRNGKey(0)
    kx, kmask = jax.random.split(key)

    # Small NCHW input consistent with Dropout2d's expectations.
    x = jax.random.normal(kx, (2, 4, 16, 16), dtype=jnp.float32)
    p = 0.5  # nn.Dropout2d() default; the module's self.p is stored but unused

    # dim=-1 (module default): masked axis packed into a 128-wide lane row.
    out = jax.block_until_ready(bomb_maker_forward(x, kmask, p=p, dim=-1))
    keep = jax.random.bernoulli(kmask, 1.0 - p, (x.shape[0], x.shape[-1]))
    scale = (keep.astype(jnp.float32) / (1.0 - p)).astype(x.dtype)
    ref = x * scale[:, None, None, :]
    assert out.shape == x.shape and out.dtype == x.dtype
    assert jnp.allclose(out, ref, atol=1e-6), "mismatch vs reference (dim=-1)"

    # dim=1 (canonical Dropout2d path): lane-dense H*W, mask along sublanes.
    out1 = jax.block_until_ready(bomb_maker_forward(x, kmask, p=p, dim=1))
    keep1 = jax.random.bernoulli(kmask, 1.0 - p, (x.shape[0], x.shape[1]))
    scale1 = (keep1.astype(jnp.float32) / (1.0 - p)).astype(x.dtype)
    ref1 = x * scale1[:, :, None, None]
    assert jnp.allclose(out1, ref1, atol=1e-6), "mismatch vs reference (dim=1)"

    print("KERNEL_OK")
</pallas_src>

<mosaic_0001>
module attributes {stable_mosaic.version = 11 : i64} {
  func.func @_bomb_mask_kernel(%arg0: i32, %arg1: i32, %arg2: i32, %arg3: memref<1x1x128xf32, #tpu.memory_space<vmem>>, %arg4: memref<1x8x128xf32, #tpu.memory_space<vmem>>, %arg5: memref<1x8x128xf32, #tpu.memory_space<vmem>>) attributes {dimension_semantics = [#tpu.dimension_semantics<parallel>, #tpu.dimension_semantics<parallel>, #tpu.dimension_semantics<parallel>], iteration_bounds = array<i64: 2, 1, 1>, scalar_prefetch = 0 : i64, scratch_operands = 0 : i64, tpu.core_type = #tpu.core_type<tc>, window_params = [{transform_indices = @transform_0, window_bounds = array<i64: 1, 1, 128>}, {transform_indices = @transform_1, window_bounds = array<i64: 1, 8, 128>}, {transform_indices = @transform_2, window_bounds = array<i64: 1, 8, 128>}]} {
    %c0 = arith.constant 0 : index
    %c0_0 = arith.constant 0 : index
    %c0_1 = arith.constant 0 : index
    %0 = vector.load %arg4[%c0, %c0_0, %c0_1] : memref<1x8x128xf32, #tpu.memory_space<vmem>>, vector<1x8x128xf32>
    %c0_2 = arith.constant 0 : index
    %c0_3 = arith.constant 0 : index
    %c0_4 = arith.constant 0 : index
    %1 = vector.load %arg3[%c0_2, %c0_3, %c0_4] : memref<1x1x128xf32, #tpu.memory_space<vmem>>, vector<1x1x128xf32>
    %2 = vector.broadcast %1 : vector<1x1x128xf32> to vector<1x8x128xf32>
    %3 = arith.mulf %0, %2 : vector<1x8x128xf32>
    %c0_5 = arith.constant 0 : index
    %c0_6 = arith.constant 0 : index
    %c0_7 = arith.constant 0 : index
    %4 = vector.load %arg5[%c0_5, %c0_6, %c0_7] : memref<1x8x128xf32, #tpu.memory_space<vmem>>, vector<1x8x128xf32>
    tpu.vector_store %arg5[%c0_5, %c0_6, %c0_7], %3 {strides = array<i32>} : memref<1x8x128xf32, #tpu.memory_space<vmem>>, vector<1x8x128xf32>,
    return
  }
  func.func @transform_0(%arg0: i32, %arg1: i32, %arg2: i32) -> (i32, i32, i32) {
    %c0_i32 = arith.constant 0 : i32
    %c0_i32_0 = arith.constant 0 : i32
    return %arg0, %c0_i32, %arg2 : i32, i32, i32
  }
  func.func @transform_1(%arg0: i32, %arg1: i32, %arg2: i32) -> (i32, i32, i32) {
    %c0_i32 = arith.constant 0 : i32
    return %arg0, %arg1, %arg2 : i32, i32, i32
  }
  func.func @transform_2(%arg0: i32, %arg1: i32, %arg2: i32) -> (i32, i32, i32) {
    %c0_i32 = arith.constant 0 : i32
    return %arg0, %arg1, %arg2 : i32, i32, i32
  }
}

</mosaic_0001>

<bundles_post_ra>
// kernel: tpu_custom_call.1
= control target key start
LH: loop header
LB: loop body
LE: loop exit
PB: predicated region body
PF: predicated region fallthrough
CT: control target
= control target key end

     0   :  { %7 = vsyncpa [#allocation3], 0  ;;  %s740_s0 = inlined_call_operand.hbm [shape: f32[2,1,128], index: 0, kind: input, shape index: {}]   ;;  %s741_s1 = inlined_call_operand.hbm [shape: f32[2,8,128], index: 1, kind: input, shape index: {}]   ;;  %s742_s2 = inlined_call_operand.hbm [shape: f32[2,8,128], index: 2, kind: output, shape index: {}]  }
   0x1   :  { %9 = vsyncpa [#allocation3 + $0x1], 0 }
   0x2   :  { %10 = vsyncpa [#allocation6], 0 }
   0x3   :  { %12 = vsyncpa [#allocation6 + $0x1], 0 }
   0x4   :  { %13 = vsyncpa [#allocation4], 0 }
   0x5   :  { %15 = vsyncpa [#allocation4 + $0x1], 0  ;;  %s602_s9 = smov 0   ;;  %s604_s10 = smov 0  }
   0x6   :  { %s606_s11 = smov 0   ;;  %s608_s12 = smov 0  }
   0x7   :  { %s610_s13 = smov 0   ;;  %s612_s14 = smov 0  }
   0x8 LB: > { %s358_s15 = sadd.s32 4294967295, %s585_s14   ;;  %s359_s16 = sadd.s32 4294967294, %s585_s14   ;;  %s585_s14 = sphi %s612_s14, %s21_s14   ;;  %s581_s13 = sphi %s610_s13, %s752_s13   ;;  %s577_s12 = sphi %s608_s12, %s751_s12   ;;  %s573_s11 = sphi %s606_s11, %s750_s11   ;;  %s569_s10 = sphi %s604_s10, %s749_s10   ;;  %s565_s9 = sphi %s602_s9, %s748_s9  }
   0x9   : > { %s40_s17 = sadd.s32 1, %s581_s13  ;;  %s49_s18 = sadd.s32 1, %s573_s11 }
   0xa   : > { %p42_p0 = scmp.ge.s32.totalorder %s40_s17, 2  ;;  %p56_p1 = scmp.ne.s32.totalorder %s573_s11, %s569_s10 }
   0xb   : > { %p57_p2 = scmp.eq.s32.totalorder %s585_s14, 0  ;;  %p62_p3 = scmp.ne.s32.totalorder %s569_s10, %s565_s9 }
   0xc   : > { %s754_s17 = smov (%p42_p0, %s40_s17), 0  ;;  %p63_p5 = scmp.eq.s32.totalorder %s358_s15, 0 }
   0xd   : > { %p643_p4 = por %p57_p2, %p56_p1  ;;  %s44_s20 = ssub.s32 %s581_s13, %s754_s17 }
   0xe   : > { %p120_p6 = scmp.eq.s32.totalorder %s358_s15, 1  ;;  %p47_p7 = scmp.eq.s32.totalorder %s44_s20, 0 }
   0xf   : > { %p649_p8 = por %p63_p5, %p62_p3  ;;  %p126_p10 = scmp.eq.s32.totalorder %s359_s16, 1 }
  0x10   : > { %p653_p9 = por %p120_p6, %p56_p1  ;;  %p361_p12 = scmp.ge.s32.totalorder %s585_s14, 2 }
  0x11   : > { %s658_s23 = scalar_select %p47_p7, %s573_s11, %s49_s18  }
  0x12   : > { %p660_p11 = por %p126_p10, %p62_p3  ;;  %p388_p13 = scmp.lt.s32.totalorder %s585_s14, 2 }
  0x13   : > { %s146_s25 = sand.u32 1, %s573_s11   ;;  %s153_s28 = scalar_lea.hbm %s740_s0, %s581_s13 }
  0x14   : > { %s149_s29 = scalar_lea.vmem [#allocation2], %s146_s25  ;;  %s155_s3 = sshll.u32 %s153_s28, 4  ;;  %s156_s3 = int_to_ptr.hbm [resolvable:$true] %s155_s3 }
  0x15   : > { %s157_s30 = sshll.u32 %s149_s29, 4  ;;  %p673_p0 = pnand %p388_p13, %p643_p4  ;;  %s158_s30 = int_to_ptr.vmem [resolvable:$true] %s157_s30 }
  0x16   : > { %p364_p1 = scmp.ge.s32.totalorder %s585_s14, 1  ;;  %p183_p2 = scmp.lt.s32.totalorder %s585_s14, 3 }
  0x17   : > { %s147_s5 = scalar_lea.sflag [#allocation3], %s146_s25  ;;  %s362_s6 = sshll.u32 %s146_s25, 3 }
  0x18   : > { %380 = dma.hbm_to_vmem [thread:$0]  (!%p673_p0), %s156_s3, 16, %s158_s30, %s147_s5  }
  0x19   : > { %p184_p3 = pnand %p364_p1, %p183_p2  ;;  %s363_s7 = sshll.u32 %s581_s13, 3 }
  0x1a   : > { %s174_s16 = scalar_lea.hbm %s741_s1, %s363_s7  ;;  %s168_s18 = scalar_lea.vmem [#allocation5], %s362_s6 }
  0x1b   : > { %s178_s19 = sshll.u32 %s168_s18, 4  ;;  %s176_s20 = sshll.u32 %s174_s16, 4  ;;  %s179_s19 = int_to_ptr.vmem [resolvable:$true] %s178_s19  ;;  %s177_s20 = int_to_ptr.hbm [resolvable:$true] %s176_s20 }
  0x1c   : > { %s165_s26 = scalar_lea.sflag [#allocation6], %s146_s25  ;;  %187 = sbr.rel (%p184_p3) target bundleno = 52 (0x34), region = 28 }
  0x1d   : > { %383 = dma.hbm_to_vmem [thread:$0]  (!%p673_p0), %s177_s20, 128, %s179_s19, %s165_s26  }
  0x1e   : > { %s688_s27 = sand.u32 (!%p184_p3), 1, %s569_s10  }
  0x1f   : > { %s190_s28 = scalar_lea.sflag (!%p184_p3), [#allocation3], %s688_s27  ;;  %s192_s29 = scalar_lea.vmem (!%p184_p3), [#allocation2], %s688_s27 }
  0x21   : > { %552 = dma.done.wait (%p649_p8), %s190_s28, 16  }
  0x22   : > { %554 = vsyncadd (%p649_p8), %s190_s28, 4294967280  ;;  %s365_s25 = sshll.u32 %s688_s27, 3  ;;  %s199_s30 = scalar_lea.sflag [#allocation6], %s688_s27 }
  0x23   : > { %s202_s3 = scalar_lea.vmem [#allocation5], %s365_s25 }
  0x24   : > { %556 = dma.done.wait (%p649_p8), %s199_s30, 128  }
  0x25   : > { %558 = vsyncadd (%p649_p8), %s199_s30, 4294967168  ;;  %s368_s4 = sshll.u32 %s577_s12, 3  ;;  %s227_s8 = scalar_lea.vmem [#allocation7], %s365_s25  ;;  %v228_v0 = vld [vmem:[%s202_s3] sm:$0xff]  ;;  %v438_v1 = vld [vmem:[%s192_s29] ss:$0 sm:$0xff] }
  0x26   : > { %s248_s7 = scalar_lea.hbm %s742_s2, %s368_s4  ;;  %s250_s15 = sshll.u32 %s227_s8, 4  ;;  %v233_v2 = vmul.f32 %v438_v1, %v228_v0  ;;  %s251_s15 = int_to_ptr.vmem [resolvable:$true] %s250_s15 }
  0x27   : > { %s252_s16 = sshll.u32 %s248_s7, 4  ;;  %s236_s18 = scalar_lea.sflag [#allocation4], %s688_s27  ;;  %s253_s16 = int_to_ptr.hbm [resolvable:$true] %s252_s16 }
  0x28   : > { %234 = vst [vmem:[%s227_s8] sm:$0xff] %v233_v2  ;;  %s513_s21 = sshra.s32 %s253_s16, 4  ;;  %s519_s26 = scalar_lea.hbm %s742_s2, 16  ;;  %s514_s21 = int_to_ptr.hbm [resolvable:$true] %s513_s21 }
  0x29   : > { %s515_s19 = scalar_lea.hbm %s514_s21, 8  ;;  %p520_p7 = scmp.lt.s32.totalorder %s514_s21, %s742_s2 }
  0x2a   : > { %p516_p4 = scmp.ne.s32.totalorder %s514_s21, %s515_s19  ;;  %p521_p8 = scmp.lt.s32.totalorder %s519_s26, %s515_s19 }
  0x2c   : > { %p517_p5 = pnand %p516_p4, %p653_p9  ;;  %p522_p10 = por %p521_p8, %p520_p7 }
  0x2e   : > { %p518_p6 = pneg %p517_p5 }
  0x30   : > { %p523_p13 = pnand %p522_p10, %p518_p6 }
  0x32   : > { %526 = shalt.err (!%p523_p13)
}
  0x33   : > { %375 = dma.vmem_to_hbm [thread:$0]  (%p653_p9), %s251_s15, 128, %s253_s16, %s236_s18  }
  0x34 PF: > { %s264_s27 = sand.u32 1, %s565_s9   ;;  %p385_p0 = pnand %p361_p12, %p660_p11 }
  0x35   : > { %s265_s29 = scalar_lea.sflag [#allocation4], %s264_s27 }
  0x36   : > { %p386_p1 = pneg %p385_p0 }
  0x38   : > { %560 = dma.done.wait (%p386_p1), %s265_s29, 128  }
  0x39   : > { %562 = vsyncadd (%p386_p1), %s265_s29, 4294967168  ;;  %s21_s14 = sadd.s32 1, %s585_s14   ;;  %s748_s9 = smov %s569_s10 }
  0x3a   : > { %p18_p2 = scmp.ge.s32.totalorder %s21_s14, 4   ;;  %s749_s10 = smov %s573_s11 }
  0x3b   : > { %s750_s11 = smov %s658_s23  ;;  %s751_s12 = smov %s581_s13 }
  0x3c   : > { %s752_s13 = smov %s754_s17  ;;  %20 = sbr.rel (!%p18_p2) target bundleno = 8 (0x8), region = 86 }
  0x41   :  { %271 = vsyncpa [#allocation3], 1 }
  0x42   :  { %273 = vsyncpa [#allocation3 + $0x1], 1 }
  0x43   :  { %274 = vsyncpa [#allocation6], 1 }
  0x44   :  { %276 = vsyncpa [#allocation6 + $0x1], 1 }
  0x45   :  { %277 = vsyncpa [#allocation4], 1 }
  0x46   :  { %279 = vsyncpa [#allocation4 + $0x1], 1 }

</bundles_post_ra>
